<compile_context>
chip_gen: v7x
topology: tpu7x:2x2x1
jax: 0.10.0
libtpu: 0.0.40
codegen_flags: <defaults>
</compile_context>

<pallas_src>
import jax
import jax.numpy as jnp
import numpy as np
from jax.experimental import pallas as pl
from jax.experimental.pallas import tpu as pltpu

IGNORE_INDEX = -100          # PyTorch CrossEntropyLoss default
NEG_INF = -1.0e30            # finite "minus infinity" for padded vocab columns
_LOSS_LANES = 128            # lane-dense per-row-tile loss partial width


def _round_up(x, m):
    return (x + m - 1) // m * m


def _vmem_capacity_bytes():
    """Per-generation VMEM capacity (v5e/v6e: 128 MiB, v7x: 64 MiB)."""
    try:
        cap = getattr(pltpu.get_tpu_info(), "vmem_capacity_bytes", None)
        if cap:
            return int(cap)
    except Exception:
        pass
    return 64 * 2**20        # conservative fallback: safe on every generation


def _maybe_pad(a, shape, dtype, fill):
    """Pad/cast `a` into `shape`/`dtype`; no-op (no HBM traffic) if already there."""
    if tuple(a.shape) == tuple(shape) and a.dtype == jnp.dtype(dtype):
        return a
    out = jnp.full(shape, fill, dtype)
    return out.at[tuple(slice(0, s) for s in a.shape)].set(a.astype(dtype))


def _make_kernel(k_tiled, with_logits):
    """Fused LM-head matmul + online-softmax cross-entropy kernel body.

    Grid: (row tiles i [parallel], vocab tiles j [arbitrary][, K tiles k]).
    bf16 MXU inputs, f32 accumulation; bias added once in the epilogue;
    per-row running max / denom / label-logit live in VMEM scratch; the loss is
    emitted as a lane-dense per-row-tile partial sum.
    """

    def kernel(x_ref, w_ref, b_ref, labels_ref, *refs):
        if with_logits:
            loss_ref, logits_ref, *scratch = refs
        else:
            loss_ref, *scratch = refs
            logits_ref = None
        if k_tiled:
            acc_ref, m_ref, l_ref, lbl_ref = scratch
        else:
            m_ref, l_ref, lbl_ref = scratch

        j = pl.program_id(1)
        nj = pl.num_programs(1)
        if k_tiled:
            k = pl.program_id(2)
            nk = pl.num_programs(2)
            first_step = jnp.logical_and(j == 0, k == 0)
        else:
            first_step = j == 0

        # Init per-row online-softmax state at the first step of each row tile.
        @pl.when(first_step)
        def _():
            m_ref[...] = jnp.full_like(m_ref, NEG_INF)
            l_ref[...] = jnp.zeros_like(l_ref)
            lbl_ref[...] = jnp.zeros_like(lbl_ref)

        # MXU: bf16 x bf16 -> f32 partial product for this K slice.
        part = jnp.dot(x_ref[...], w_ref[...], preferred_element_type=jnp.float32)

        def epilogue(logits):
            # logits: [tm, tn] f32 (bias already added, no acc store/reload)
            if with_logits:
                logits_ref[...] = logits.astype(logits_ref.dtype)  # bf16 writeback

            labels = labels_ref[...]                               # [tm, 1] i32

            # Online logsumexp update for this vocab tile.
            tile_max = jnp.max(logits, axis=-1, keepdims=True)
            m_prev = m_ref[...]
            m_new = jnp.maximum(m_prev, tile_max)
            alpha = jnp.exp(m_prev - m_new)
            l_ref[...] = alpha * l_ref[...] + jnp.sum(jnp.exp(logits - m_new),
                                                      axis=-1, keepdims=True)
            m_ref[...] = m_new

            # Label logit: local column iota vs (labels - j*tn)  ([tm,1] subtract
            # instead of adding j*tn to a full [tm,tn] iota).
            local_lab = labels - j * logits.shape[1]
            col = jax.lax.broadcasted_iota(jnp.int32, logits.shape, 1)
            lbl_ref[...] += jnp.sum(jnp.where(col == local_lab, logits, 0.0),
                                    axis=-1, keepdims=True)

            # Finalize after the last vocab tile: one lane-dense (8,128) store of
            # this row tile's partial loss sum (unmasked vst, tiny writeback).
            @pl.when(j == nj - 1)
            def _():
                lse = m_ref[...] + jnp.log(l_ref[...])
                valid = labels != IGNORE_INDEX
                loss_rows = jnp.where(valid, lse - lbl_ref[...], 0.0)   # [tm, 1]
                loss_ref[...] = jnp.full(loss_ref.shape, jnp.sum(loss_rows),
                                         dtype=loss_ref.dtype)

        if k_tiled:
            # k == 0: plain store (no zero-init + RMW); middle k: accumulate;
            # last k: consume `part` directly in the epilogue.
            @pl.when(k == 0)
            def _():
                acc_ref[...] = part

            @pl.when(jnp.logical_and(k > 0, k < nk - 1))
            def _():
                acc_ref[...] += part

            @pl.when(k == nk - 1)
            def _():
                epilogue(acc_ref[...] + part + b_ref[...])
        else:
            epilogue(part + b_ref[...])

    return kernel


def _plan_tiles(N, H, V, block_m, block_n, block_k, with_logits, cap):
    """Pick tile sizes against the generation's VMEM capacity.

    W streaming scales ~1/tm and x streaming ~1/tn, so auto tiles start at
    512x1024 (v7x roofline balance) and grow into spare VMEM (v5e/v6e: 128 MiB
    -> up to 2048).  K is collapsed (single full-H pass) whenever the working
    set fits; otherwise a 512-wide K loop is used.
    """
    budget = int(0.70 * cap)          # leave Mosaic internal-scratch headroom
    auto_m, auto_n = block_m is None, block_n is None
    tm = min(512 if auto_m else block_m, _round_up(N, 16))
    tn = min(1024 if auto_n else block_n, _round_up(V, 128))
    h128 = _round_up(H, 128)
    tk = h128 if block_k is None else min(_round_up(block_k, 128), h128)

    def est(tm_, tn_, tk_, ktiled_):
        byt = 2 * 2 * (tm_ * tk_ + tk_ * tn_)          # x, W bf16 (double-buffered)
        if with_logits:
            byt += 2 * 2 * tm_ * tn_                   # bf16 logits out (2-buffered)
        byt += 2 * 4 * tm_ * tn_                       # f32 logits / exp temporaries
        if ktiled_:
            byt += 4 * tm_ * tn_                       # f32 K-loop accumulator
        byt += 2 * 4 * (tm_ + tn_) + 3 * 4 * tm_ + 2 * 4 * 8 * _LOSS_LANES
        return byt

    k_tiled = _round_up(H, tk) // tk > 1
    if not k_tiled and tk > 512 and est(tm, tn, tk, False) > budget:
        tk = 512                                       # collapsed K blew VMEM
        k_tiled = _round_up(H, tk) // tk > 1

    while est(tm, tn, tk, k_tiled) > budget:           # shrink (rare)
        if tn > 256 and (tn // 2) % 128 == 0:
            tn //= 2
        elif tm > 128 and (tm // 2) % 8 == 0:
            tm //= 2
        else:
            break

    while True:                                        # grow into spare VMEM
        cand = []
        if auto_m and tm < 2048 and N >= 2 * tm:
            cand.append((tm, "m"))
        if auto_n and tn < 2048 and V >= 2 * tn:
            cand.append((tn, "n"))
        cand.sort()                                    # grow the smaller tile first
        for _, which in cand:
            tm2 = tm * 2 if which == "m" else tm
            tn2 = tn * 2 if which == "n" else tn
            if est(tm2, tn2, tk, k_tiled) <= budget:
                tm, tn = tm2, tn2
                break
        else:
            break

    # v7x megacore: keep >= 2 row tiles on the "parallel" axis when rows allow.
    if N > 128 and tm >= 256 and _round_up(N, tm) // tm < 2:
        tm //= 2

    N_pad, V_pad, H_pad = _round_up(N, tm), _round_up(V, tn), _round_up(H, tk)
    k_tiled = H_pad // tk > 1
    return tm, tn, tk, k_tiled, N_pad, H_pad, V_pad, est(tm, tn, tk, k_tiled)


def learner_forward(input_ids, labels, embed_table, w, b, *,
                    block_m=None, block_n=None, block_k=None,
                    return_logits=True, head_params=None):
    """Mirrors Learner.forward: returns (loss, out).

    block_m/block_n: None -> auto (>=512/1024, grown into the generation's VMEM).
    block_k: None -> collapse the K axis when it fits, else a 512-wide K loop.
    return_logits=False skips the N x V bf16 logits writeback (loss-only mode).
    head_params: optional pre-padded (w_bf16[H_pad,V_pad], b_f32[1,V_pad]) so the
    [H,V] pad/cast is not re-streamed through HBM every training step.
    """
    B, S = input_ids.shape
    H = embed_table.shape[1]
    V = w.shape[1]
    N = B * S

    # "model" front-end: embedding gather, kept in bf16 (MXU-native, half HBM).
    # TODO(synk): fuse the gather into the kernel (scalar-prefetch row gather).
    x = jnp.take(embed_table.astype(jnp.bfloat16), input_ids.reshape(-1), axis=0)
    labels_flat = labels.reshape(-1).astype(jnp.int32)

    cap = _vmem_capacity_bytes()
    tm, tn, tk, k_tiled, N_pad, H_pad, V_pad, est_bytes = _plan_tiles(
        N, H, V, block_m, block_n, block_k, return_logits, cap)

    # Pads/casts are no-ops when already tile-aligned.
    x_p = _maybe_pad(x, (N_pad, H_pad), jnp.bfloat16, 0.0)
    lab_p = _maybe_pad(labels_flat.reshape(N, 1), (N_pad, 1), jnp.int32,
                       IGNORE_INDEX)
    if head_params is not None:
        w_p, b_p = head_params
        assert w_p.shape == (H_pad, V_pad) and w_p.dtype == jnp.bfloat16
        assert b_p.shape == (1, V_pad) and b_p.dtype == jnp.float32
    else:
        w_p = _maybe_pad(w, (H_pad, V_pad), jnp.bfloat16, 0.0)
        # Padded vocab columns get a hugely negative bias -> vanish from softmax.
        b_p = _maybe_pad(b.reshape(1, V), (1, V_pad), jnp.float32, NEG_INF)

    # Per-generation VMEM limit (no hard 64 MiB cap on v5e/v6e's 128 MiB).
    vmem_limit = int(min(max(2 * est_bytes, 32 * 2**20), int(0.92 * cap)))

    kernel = _make_kernel(k_tiled, return_logits)
    gi, gj = N_pad // tm, V_pad // tn

    # TODO(synk): if xprof shows exposed DMA waits on the W tile on v6e at
    # tn>=1024, add pipeline_mode=pl.Buffered(3) to the W BlockSpec only.
    if k_tiled:
        grid = (gi, gj, H_pad // tk)
        in_specs = [
            pl.BlockSpec((tm, tk), lambda i, j, k: (i, k)),
            pl.BlockSpec((tk, tn), lambda i, j, k: (k, j)),
            pl.BlockSpec((1, tn), lambda i, j, k: (0, j)),
            pl.BlockSpec((tm, 1), lambda i, j, k: (i, 0)),
        ]
        loss_spec = pl.BlockSpec((1, 8, _LOSS_LANES), lambda i, j, k: (i, 0, 0))
        logits_spec = pl.BlockSpec((tm, tn), lambda i, j, k: (i, j))
        dims = ("parallel", "arbitrary", "arbitrary")
        scratch = [pltpu.VMEM((tm, tn), jnp.float32)]      # K-loop accumulator
    else:
        grid = (gi, gj)
        in_specs = [
            pl.BlockSpec((tm, H_pad), lambda i, j: (i, 0)),
            pl.BlockSpec((H_pad, tn), lambda i, j: (0, j)),
            pl.BlockSpec((1, tn), lambda i, j: (0, j)),
            pl.BlockSpec((tm, 1), lambda i, j: (i, 0)),
        ]
        loss_spec = pl.BlockSpec((1, 8, _LOSS_LANES), lambda i, j: (i, 0, 0))
        logits_spec = pl.BlockSpec((tm, tn), lambda i, j: (i, j))
        dims = ("parallel", "arbitrary")
        scratch = []
    scratch += [pltpu.VMEM((tm, 1), jnp.float32)] * 3      # running max/denom/label

    out_shape = [jax.ShapeDtypeStruct((gi, 8, _LOSS_LANES), jnp.float32)]
    out_specs = [loss_spec]
    if return_logits:
        out_shape.append(jax.ShapeDtypeStruct((N_pad, V_pad), jnp.bfloat16))
        out_specs.append(logits_spec)

    outs = pl.pallas_call(
        kernel,
        out_shape=tuple(out_shape),
        grid_spec=pltpu.PrefetchScalarGridSpec(
            num_scalar_prefetch=0,
            grid=grid,
            in_specs=in_specs,
            out_specs=tuple(out_specs),
            scratch_shapes=scratch,
        ),
        compiler_params=pltpu.CompilerParams(
            dimension_semantics=dims,
            vmem_limit_bytes=vmem_limit,
        ),
    )(x_p, w_p, b_p, lab_p)

    # Tiny mean reduction (ignore_index masking) in the wrapper so the row-tile
    # grid axis stays "parallel" (megacore-safe on v7x).
    loss_parts = outs[0][:, 0, 0]                          # [gi] per-tile partial sums
    valid = labels_flat != IGNORE_INDEX
    count = jnp.maximum(jnp.sum(valid), 1).astype(jnp.float32)
    loss = jnp.sum(loss_parts) / count

    if not return_logits:
        return loss, None
    out = outs[1][:N, :V].reshape(B, S, V)                 # model output ("out"), bf16
    return loss, out


def _reference(input_ids, labels, embed_table, w, b):
    """Pure-JAX reference with the same bf16 MXU-input rounding."""
    x = jnp.take(embed_table.astype(jnp.bfloat16),
                 input_ids.reshape(-1), axis=0).astype(jnp.float32)
    wf = w.astype(jnp.bfloat16).astype(jnp.float32)
    logits = x @ wf + b[None, :].astype(jnp.float32)
    logp = jax.nn.log_softmax(logits, axis=-1)
    lab = labels.reshape(-1)
    nll = -jnp.take_along_axis(logp, jnp.maximum(lab, 0)[:, None], axis=-1)[:, 0]
    valid = lab != IGNORE_INDEX
    loss = jnp.sum(jnp.where(valid, nll, 0.0)) / jnp.maximum(jnp.sum(valid), 1)
    return loss, logits.reshape(*input_ids.shape, w.shape[1])


if __name__ == "__main__":
    key = jax.random.PRNGKey(0)
    ks = jax.random.split(key, 10)

    # --- Case 1: default plan (collapsed K, single row / vocab tile) ----------
    B, S, H, V, VOCAB_IN = 2, 8, 32, 128, 64
    input_ids = jax.random.randint(ks[0], (B, S), 0, VOCAB_IN, dtype=jnp.int32)
    labels = jax.random.randint(ks[1], (B, S), 0, V, dtype=jnp.int32)
    labels = labels.at[0, 0].set(IGNORE_INDEX)          # exercise ignore_index=-100
    embed_table = jax.random.normal(ks[2], (VOCAB_IN, H), jnp.float32) * 0.02
    w = jax.random.normal(ks[3], (H, V), jnp.float32) * 0.02
    b = jax.random.normal(ks[4], (V,), jnp.float32) * 0.01

    loss, out = learner_forward(input_ids, labels, embed_table, w, b)
    jax.block_until_ready((loss, out))
    ref_loss, ref_out = _reference(input_ids, labels, embed_table, w, b)
    np.testing.assert_allclose(np.asarray(loss), np.asarray(ref_loss),
                               rtol=1e-4, atol=1e-4)
    np.testing.assert_allclose(np.asarray(out, dtype=np.float32),
                               np.asarray(ref_out), rtol=2e-2, atol=2e-3)

    # Loss-only mode (skips the N x V logits writeback).
    loss_only, _ = learner_forward(input_ids, labels, embed_table, w, b,
                                   return_logits=False)
    jax.block_until_ready(loss_only)
    np.testing.assert_allclose(np.asarray(loss_only), np.asarray(ref_loss),
                               rtol=1e-4, atol=1e-4)

    # --- Case 2: forced multi row/vocab tiles + K-tiled fallback kernel -------
    B2, S2, H2, V2 = 2, 16, 256, 384
    ids2 = jax.random.randint(ks[5], (B2, S2), 0, VOCAB_IN, dtype=jnp.int32)
    lab2 = jax.random.randint(ks[6], (B2, S2), 0, V2, dtype=jnp.int32)
    lab2 = lab2.at[1, 3].set(IGNORE_INDEX)
    emb2 = jax.random.normal(ks[7], (VOCAB_IN, H2), jnp.float32) * 0.02
    w2 = jax.random.normal(ks[8], (H2, V2), jnp.float32) * 0.02
    b2 = jax.random.normal(ks[9], (V2,), jnp.float32) * 0.01

    loss2, out2 = learner_forward(ids2, lab2, emb2, w2, b2,
                                  block_m=8, block_n=128, block_k=128)
    jax.block_until_ready((loss2, out2))
    ref_loss2, ref_out2 = _reference(ids2, lab2, emb2, w2, b2)
    np.testing.assert_allclose(np.asarray(loss2), np.asarray(ref_loss2),
                               rtol=1e-3, atol=1e-3)
    np.testing.assert_allclose(np.asarray(out2, dtype=np.float32),
                               np.asarray(ref_out2), rtol=2e-2, atol=2e-3)

    print("KERNEL_OK")
</pallas_src>

<mosaic_0001>
module attributes {stable_mosaic.version = 11 : i64} {
  func.func @kernel(%arg0: i32, %arg1: i32, %arg2: memref<16x128xbf16, #tpu.memory_space<vmem>>, %arg3: memref<128x128xbf16, #tpu.memory_space<vmem>>, %arg4: memref<1x128xf32, #tpu.memory_space<vmem>>, %arg5: memref<16x1xi32, #tpu.memory_space<vmem>>, %arg6: memref<1x8x128xf32, #tpu.memory_space<vmem>>, %arg7: memref<16x128xbf16, #tpu.memory_space<vmem>>, %arg8: memref<16x1xf32, #tpu.memory_space<vmem>>, %arg9: memref<16x1xf32, #tpu.memory_space<vmem>>, %arg10: memref<16x1xf32, #tpu.memory_space<vmem>>) attributes {dimension_semantics = [#tpu.dimension_semantics<parallel>, #tpu.dimension_semantics<arbitrary>], iteration_bounds = array<i64: 1, 1>, scalar_prefetch = 0 : i64, scratch_operands = 3 : i64, tpu.core_type = #tpu.core_type<tc>, window_params = [{transform_indices = @transform_0, window_bounds = array<i64: 16, 128>}, {transform_indices = @transform_1, window_bounds = array<i64: 128, 128>}, {transform_indices = @transform_2, window_bounds = array<i64: 1, 128>}, {transform_indices = @transform_3, window_bounds = array<i64: 16, 1>}, {transform_indices = @transform_4, window_bounds = array<i64: 1, 8, 128>}, {transform_indices = @transform_5, window_bounds = array<i64: 16, 128>}]} {
    %c0_i32 = arith.constant 0 : i32
    %0 = arith.cmpi eq, %arg1, %c0_i32 : i32
    %1 = arith.extui %0 : i1 to i32
    %c0_i32_0 = arith.constant 0 : i32
    %2 = arith.cmpi ne, %1, %c0_i32_0 : i32
    scf.if %2 {
      %cst_28 = arith.constant -1.000000e+30 : f32
      %44 = vector.broadcast %cst_28 : f32 to vector<16x1xf32>
      %c0_29 = arith.constant 0 : index
      %c0_30 = arith.constant 0 : index
      %45 = vector.load %arg8[%c0_29, %c0_30] : memref<16x1xf32, #tpu.memory_space<vmem>>, vector<16x1xf32>
      tpu.vector_store %arg8[%c0_29, %c0_30], %44 {strides = array<i32>} : memref<16x1xf32, #tpu.memory_space<vmem>>, vector<16x1xf32>,
      %cst_31 = arith.constant 0.000000e+00 : f32
      %46 = vector.broadcast %cst_31 : f32 to vector<16x1xf32>
      %c0_32 = arith.constant 0 : index
      %c0_33 = arith.constant 0 : index
      %47 = vector.load %arg9[%c0_32, %c0_33] : memref<16x1xf32, #tpu.memory_space<vmem>>, vector<16x1xf32>
      tpu.vector_store %arg9[%c0_32, %c0_33], %46 {strides = array<i32>} : memref<16x1xf32, #tpu.memory_space<vmem>>, vector<16x1xf32>,
      %cst_34 = arith.constant 0.000000e+00 : f32
      %48 = vector.broadcast %cst_34 : f32 to vector<16x1xf32>
      %c0_35 = arith.constant 0 : index
      %c0_36 = arith.constant 0 : index
      %49 = vector.load %arg10[%c0_35, %c0_36] : memref<16x1xf32, #tpu.memory_space<vmem>>, vector<16x1xf32>
      tpu.vector_store %arg10[%c0_35, %c0_36], %48 {strides = array<i32>} : memref<16x1xf32, #tpu.memory_space<vmem>>, vector<16x1xf32>,
    } else {
    }
    %c0 = arith.constant 0 : index
    %c0_1 = arith.constant 0 : index
    %3 = vector.load %arg2[%c0, %c0_1] : memref<16x128xbf16, #tpu.memory_space<vmem>>, vector<16x128xbf16>
    %c0_2 = arith.constant 0 : index
    %c0_3 = arith.constant 0 : index
    %4 = vector.load %arg3[%c0_2, %c0_3] : memref<128x128xbf16, #tpu.memory_space<vmem>>, vector<128x128xbf16>
    %cst = arith.constant dense<0.000000e+00> : vector<16x128xf32>
    %5 = tpu.matmul %3, %4, %cst {dimension_numbers = #tpu.dot_dimension_numbers<[1], [0], [0], [1], [0, 0, 1, 1], [], []>} : vector<16x128xbf16>, vector<128x128xbf16>, vector<16x128xf32> -> vector<16x128xf32>
    %c0_4 = arith.constant 0 : index
    %c0_5 = arith.constant 0 : index
    %6 = vector.load %arg4[%c0_4, %c0_5] : memref<1x128xf32, #tpu.memory_space<vmem>>, vector<1x128xf32>
    %7 = vector.broadcast %6 : vector<1x128xf32> to vector<16x128xf32>
    %8 = arith.addf %5, %7 : vector<16x128xf32>
    %9 = arith.truncf %8 : vector<16x128xf32> to vector<16x128xbf16>
    %c0_6 = arith.constant 0 : index
    %c0_7 = arith.constant 0 : index
    %10 = vector.load %arg7[%c0_6, %c0_7] : memref<16x128xbf16, #tpu.memory_space<vmem>>, vector<16x128xbf16>
    tpu.vector_store %arg7[%c0_6, %c0_7], %9 {strides = array<i32>} : memref<16x128xbf16, #tpu.memory_space<vmem>>, vector<16x128xbf16>,
    %c0_8 = arith.constant 0 : index
    %c0_9 = arith.constant 0 : index
    %11 = vector.load %arg5[%c0_8, %c0_9] : memref<16x1xi32, #tpu.memory_space<vmem>>, vector<16x1xi32>
    %cst_10 = arith.constant dense<0xFF800000> : vector<16xf32>
    %12 = vector.multi_reduction <maximumf>, %8, %cst_10 [1] : vector<16x128xf32> to vector<16xf32>
    %13 = vector.shape_cast %12 : vector<16xf32> to vector<16x1xf32>
    %c0_11 = arith.constant 0 : index
    %c0_12 = arith.constant 0 : index
    %14 = vector.load %arg8[%c0_11, %c0_12] : memref<16x1xf32, #tpu.memory_space<vmem>>, vector<16x1xf32>
    %15 = arith.maximumf %14, %13 : vector<16x1xf32>
    %16 = arith.subf %14, %15 : vector<16x1xf32>
    %17 = math.exp %16 : vector<16x1xf32>
    %c0_13 = arith.constant 0 : index
    %c0_14 = arith.constant 0 : index
    %18 = vector.load %arg9[%c0_13, %c0_14] : memref<16x1xf32, #tpu.memory_space<vmem>>, vector<16x1xf32>
    %19 = arith.mulf %17, %18 : vector<16x1xf32>
    %20 = vector.broadcast %15 : vector<16x1xf32> to vector<16x128xf32>
    %21 = arith.subf %8, %20 : vector<16x128xf32>
    %22 = math.exp %21 : vector<16x128xf32>
    %cst_15 = arith.constant dense<0.000000e+00> : vector<16xf32>
    %23 = vector.multi_reduction <add>, %22, %cst_15 [1] : vector<16x128xf32> to vector<16xf32>
    %24 = vector.shape_cast %23 : vector<16xf32> to vector<16x1xf32>
    %25 = arith.addf %19, %24 : vector<16x1xf32>
    %c0_16 = arith.constant 0 : index
    %c0_17 = arith.constant 0 : index
    %26 = vector.load %arg9[%c0_16, %c0_17] : memref<16x1xf32, #tpu.memory_space<vmem>>, vector<16x1xf32>
    tpu.vector_store %arg9[%c0_16, %c0_17], %25 {strides = array<i32>} : memref<16x1xf32, #tpu.memory_space<vmem>>, vector<16x1xf32>,
    %c0_18 = arith.constant 0 : index
    %c0_19 = arith.constant 0 : index
    %27 = vector.load %arg8[%c0_18, %c0_19] : memref<16x1xf32, #tpu.memory_space<vmem>>, vector<16x1xf32>
    tpu.vector_store %arg8[%c0_18, %c0_19], %15 {strides = array<i32>} : memref<16x1xf32, #tpu.memory_space<vmem>>, vector<16x1xf32>,
    %c128_i32 = arith.constant 128 : i32
    %28 = arith.muli %arg1, %c128_i32 : i32
    %29 = vector.broadcast %28 : i32 to vector<16x1xi32>
    %30 = arith.subi %11, %29 : vector<16x1xi32>
    %31 = tpu.iota {dimensions = array<i32: 1>} : vector<16x128xi32>
    %c0_20 = arith.constant 0 : index
    %c0_21 = arith.constant 0 : index
    %32 = vector.load %arg10[%c0_20, %c0_21] : memref<16x1xf32, #tpu.memory_space<vmem>>, vector<16x1xf32>
    %33 = vector.broadcast %30 : vector<16x1xi32> to vector<16x128xi32>
    %34 = arith.cmpi eq, %31, %33 : vector<16x128xi32>
    %cst_22 = arith.constant 0.000000e+00 : f32
    %35 = vector.broadcast %cst_22 : f32 to vector<16x128xf32>
    %36 = arith.select %34, %8, %35 : vector<16x128xi1>, vector<16x128xf32>
    %cst_23 = arith.constant dense<0.000000e+00> : vector<16xf32>
    %37 = vector.multi_reduction <add>, %36, %cst_23 [1] : vector<16x128xf32> to vector<16xf32>
    %38 = vector.shape_cast %37 : vector<16xf32> to vector<16x1xf32>
    %39 = arith.addf %32, %38 : vector<16x1xf32>
    %c0_24 = arith.constant 0 : index
    %c0_25 = arith.constant 0 : index
    %40 = vector.load %arg10[%c0_24, %c0_25] : memref<16x1xf32, #tpu.memory_space<vmem>>, vector<16x1xf32>
    tpu.vector_store %arg10[%c0_24, %c0_25], %39 {strides = array<i32>} : memref<16x1xf32, #tpu.memory_space<vmem>>, vector<16x1xf32>,
    %c0_i32_26 = arith.constant 0 : i32
    %41 = arith.cmpi eq, %arg1, %c0_i32_26 : i32
    %42 = arith.extui %41 : i1 to i32
    %c0_i32_27 = arith.constant 0 : i32
    %43 = arith.cmpi ne, %42, %c0_i32_27 : i32
    scf.if %43 {
      %c0_28 = arith.constant 0 : index
      %c0_29 = arith.constant 0 : index
      %44 = vector.load %arg8[%c0_28, %c0_29] : memref<16x1xf32, #tpu.memory_space<vmem>>, vector<16x1xf32>
      %c0_30 = arith.constant 0 : index
      %c0_31 = arith.constant 0 : index
      %45 = vector.load %arg9[%c0_30, %c0_31] : memref<16x1xf32, #tpu.memory_space<vmem>>, vector<16x1xf32>
      %46 = math.log %45 : vector<16x1xf32>
      %47 = arith.addf %44, %46 : vector<16x1xf32>
      %c-100_i32 = arith.constant -100 : i32
      %48 = vector.broadcast %c-100_i32 : i32 to vector<16x1xi32>
      %49 = arith.cmpi ne, %11, %48 : vector<16x1xi32>
      %c0_32 = arith.constant 0 : index
      %c0_33 = arith.constant 0 : index
      %50 = vector.load %arg10[%c0_32, %c0_33] : memref<16x1xf32, #tpu.memory_space<vmem>>, vector<16x1xf32>
      %51 = arith.subf %47, %50 : vector<16x1xf32>
      %cst_34 = arith.constant 0.000000e+00 : f32
      %52 = vector.broadcast %cst_34 : f32 to vector<16x1xf32>
      %53 = arith.select %49, %51, %52 : vector<16x1xi1>, vector<16x1xf32>
      %54 = vector.shape_cast %53 : vector<16x1xf32> to vector<1x16x1xf32>
      %cst_35 = arith.constant dense<0.000000e+00> : vector<1xf32>
      %55 = vector.multi_reduction <add>, %54, %cst_35 [1, 2] : vector<1x16x1xf32> to vector<1xf32>
      %56 = vector.shape_cast %55 : vector<1xf32> to vector<1x1x1xf32>
      %57 = vector.extract %56[0, 0, 0] : f32 from vector<1x1x1xf32>
      %58 = vector.broadcast %57 : f32 to vector<1x8x128xf32>
      %c0_36 = arith.constant 0 : index
      %c0_37 = arith.constant 0 : index
      %c0_38 = arith.constant 0 : index
      %59 = vector.load %arg6[%c0_36, %c0_37, %c0_38] : memref<1x8x128xf32, #tpu.memory_space<vmem>>, vector<1x8x128xf32>
      tpu.vector_store %arg6[%c0_36, %c0_37, %c0_38], %58 {strides = array<i32>} : memref<1x8x128xf32, #tpu.memory_space<vmem>>, vector<1x8x128xf32>,
    } else {
    }
    return
  }
  func.func @transform_0(%arg0: i32, %arg1: i32) -> (i32, i32) {
    %c0_i32 = arith.constant 0 : i32
    %c0_i32_0 = arith.constant 0 : i32
    return %arg0, %c0_i32 : i32, i32
  }
  func.func @transform_1(%arg0: i32, %arg1: i32) -> (i32, i32) {
    %c0_i32 = arith.constant 0 : i32
    %c0_i32_0 = arith.constant 0 : i32
    return %c0_i32, %arg1 : i32, i32
  }
  func.func @transform_2(%arg0: i32, %arg1: i32) -> (i32, i32) {
    %c0_i32 = arith.constant 0 : i32
    %c0_i32_0 = arith.constant 0 : i32
    return %c0_i32, %arg1 : i32, i32
  }
  func.func @transform_3(%arg0: i32, %arg1: i32) -> (i32, i32) {
    %c0_i32 = arith.constant 0 : i32
    %c0_i32_0 = arith.constant 0 : i32
    return %arg0, %c0_i32 : i32, i32
  }
  func.func @transform_4(%arg0: i32, %arg1: i32) -> (i32, i32, i32) {
    %c0_i32 = arith.constant 0 : i32
    %c0_i32_0 = arith.constant 0 : i32
    %c0_i32_1 = arith.constant 0 : i32
    return %arg0, %c0_i32, %c0_i32_0 : i32, i32, i32
  }
  func.func @transform_5(%arg0: i32, %arg1: i32) -> (i32, i32) {
    %c0_i32 = arith.constant 0 : i32
    return %arg0, %arg1 : i32, i32
  }
}

</mosaic_0001>

<bundles_post_ra>
// kernel: tpu_custom_call.1
= control target key start
LH: loop header
LB: loop body
LE: loop exit
PB: predicated region body
PF: predicated region fallthrough
CT: control target
= control target key end

     0   :  { %11 = vsyncpa [#allocation6], 0  ;;  %s585_s0 = inlined_call_operand.vmem [shape: bf16[16,128], index: 0, kind: input, shape index: {}]   ;;  %s586_s1 = inlined_call_operand.hbm [shape: bf16[128,128], index: 1, kind: input, shape index: {}]   ;;  %s587_s2 = inlined_call_operand.vmem [shape: f32[1,128], index: 2, kind: input, shape index: {}]   ;;  %s588_s3 = inlined_call_operand.vmem [shape: s32[16,1], index: 3, kind: input, shape index: {}]   ;;  %s589_s4 = inlined_call_operand.hbm [shape: f32[1,8,128], index: 4, kind: output, shape index: {0}]   ;;  %s590_s5 = inlined_call_operand.hbm [shape: bf16[16,128], index: 5, kind: output, shape index: {1}]  }
   0x1   :  { %12 = vsyncpa [#allocation7], 0 }
   0x2   :  { %13 = vsyncpa [#allocation10], 0  ;;  %s470_s18 = smov [#allocation5]   ;;  %s398_s22 = scalar_lea.hbm %s586_s1, 1024 }
   0x3   :  { %s21_s19 = sshll.u32 %s470_s18, 4  ;;  %p399_p0 = scmp.ne.s32.totalorder %s586_s1, %s398_s22  ;;  %s22_s19 = int_to_ptr.vmem [resolvable:$true] %s21_s19 }
   0x4   :  { %p402_p1 = scmp.lt.u32.totalorder %s398_s22, %s586_s1 }
   0x6   :  { %p404_p2 = pnand %p402_p1, %p399_p0 }
   0x8   :  { %407 = shalt.err (!%p404_p2)
}
   0x9   :  { %s408_s27 = scalar_lea.vmem %s22_s19, 1024  ;;  %p413_p4 = scmp.lt.s32.totalorder %s22_s19, %s22_s19 }
   0xa   :  { %p409_p3 = scmp.ne.s32.totalorder %s22_s19, %s408_s27  ;;  %p414_p5 = scmp.lt.s32.totalorder %s408_s27, %s408_s27 }
   0xc   :  { %p415_p6 = por %p414_p5, %p413_p4 }
   0xe   :  { %p416_p7 = pnand %p415_p6, %p409_p3 }
  0x10   :  { %419 = shalt.err (!%p416_p7)
}
  0x11   :  { %s471_s28 = smov 64   ;;  %s472_s29 = smov 4  }
  0x12   :  { %27 = dma.hbm_to_vmem [thread:$0]  %s586_s1, 1024, %s22_s19, [#allocation6], %s471_s28, %s471_s28, %s472_s29  }
  0x13   :  { %464 = dma.done.wait [#allocation6], 1024  }
  0x14   :  { %465 = vsyncadd [#allocation6], 4294966272  ;;  %v473_v0 = vmov 0.0   ;;  %vm474_vm0 = vmmov 0   ;;  %v377_v1 = vld [vmem:[#allocation5] sm:$0xff]   ;;  %v378_v2 = vld [vmem:[#allocation5 + $0x8] sm:$0xff]   ;;  %v228_v28 = vlaneseq }
  0x15   :  { %344 = vmatprep.subr.bf16.mxu0 %v473_v0  ;;  %360 = vmatprep.mubr.msk.bf16.mxu0 %vm474_vm0, %v473_v0  ;;  %v379_v3 = vld [vmem:[#allocation5 + $0x10] sm:$0xff]   ;;  %v380_v4 = vld [vmem:[#allocation5 + $0x18] sm:$0xff]   ;;  %v381_v5 = vld [vmem:[#allocation5 + $0x20] sm:$0xff]   ;;  %v475_v10 = vmov 0   ;;  %vm40_vm1 = vcmask 7168  }
  0x16   :  { %345 = vmatpush3.bf16.msra.mxu0 %v377_v1  ;;  %v382_v6 = vld [vmem:[#allocation5 + $0x28] sm:$0xff]   ;;  %v383_v7 = vld [vmem:[#allocation5 + $0x30] sm:$0xff]   ;;  %v384_v8 = vld [vmem:[#allocation5 + $0x38] sm:$0xff]   ;;  %376 = vset.pattern.permute.xlu0 %v475_v10  ;;  %v476_v11 = vmov -1e+30   ;;  %43 = vst.msk [vmem:[#allocation3] sm:$0xff] %vm40_vm1, %v473_v0 }
  0x17   :  { %346 = vmatprep.subr.bf16.mxu0 %v473_v0  ;;  %v385_v9 = vld [vmem:[%s585_s0] sm:$0xff]   ;;  %375 = vset.pattern.permute.xlu1 %v475_v10  ;;  %41 = vst.msk [vmem:[#allocation2] sm:$0xff] %vm40_vm1, %v476_v11  ;;  %42 = vst.msk [vmem:[#allocation2 + $0x8] sm:$0xff] %vm40_vm1, %v476_v11  ;;  %v547_v30 = vld [vmem:[%s588_s3 + $0x8] sm:$0xff]  ;;  %v229_v31 = vand.u32 127, %v228_v28 }
  0x18   :  { %44 = vst.msk [vmem:[#allocation3 + $0x8] sm:$0xff] %vm40_vm1, %v473_v0  ;;  %45 = vst.msk [vmem:[#allocation4] sm:$0xff] %vm40_vm1, %v473_v0  ;;  %v316_v12 = vld [vmem:[%s587_s2] ss:$0 sm:$0xff]  ;;  %vm264_vm5 = vcmp.ne.s32.totalorder %v547_v30, 4294967196 }
  0x19   :  { %46 = vst.msk [vmem:[#allocation4 + $0x8] sm:$0xff] %vm40_vm1, %v473_v0  ;;  %v539_v20 = vld [vmem:[%s588_s3] sm:$0xff]  ;;  %s477_s3 = smov [#allocation9]  }
  0x1a   :  { %347 = vmatpush3.bf16.msra.mxu0 %v378_v2  ;;  %vm263_vm4 = vcmp.ne.s32.totalorder %v539_v20, 4294967196  ;;  %s300_s12 = sshll.u32 %s477_s3, 4  ;;  %s301_s12 = int_to_ptr.vmem [resolvable:$true] %s300_s12 }
  0x1b   :  { %348 = vmatprep.subr.bf16.mxu0 %v473_v0  ;;  %s420_s13 = scalar_lea.vmem %s301_s12, 128  ;;  %p425_p9 = scmp.lt.s32.totalorder %s301_s12, %s301_s12 }
  0x1c   :  { %p421_p8 = scmp.ne.s32.totalorder %s301_s12, %s420_s13  ;;  %p426_p10 = scmp.lt.s32.totalorder %s420_s13, %s420_s13 }
  0x1d   :  { %v193_v50 = vld [vmem:[#allocation3] sm:$0xff] }
  0x1e   :  { %349 = vmatpush3.bf16.msra.mxu0 %v379_v3  ;;  %v183_v21 = vld [vmem:[#allocation2] sm:$0xff]  ;;  %v184_v24 = vld [vmem:[#allocation2 + $0x8] sm:$0xff]  ;;  %p427_p11 = por %p426_p10, %p425_p9 }
  0x1f   :  { %350 = vmatprep.subr.bf16.mxu0 %v473_v0  ;;  %v230_v44 = vld [vmem:[#allocation4] sm:$0xff]  ;;  %v194_v54 = vld [vmem:[#allocation3 + $0x8] sm:$0xff] }
  0x20   :  { %v231_v59 = vld [vmem:[#allocation4 + $0x8] sm:$0xff]  ;;  %p428_p12 = pnand %p427_p11, %p421_p8 }
  0x22   :  { %351 = vmatpush3.bf16.msra.mxu0 %v380_v4 }
  0x23   :  { %352 = vmatprep.subr.bf16.mxu0 %v473_v0 }
  0x26   :  { %353 = vmatpush3.bf16.msra.mxu0 %v381_v5 }
  0x27   :  { %354 = vmatprep.subr.bf16.mxu0 %v473_v0 }
  0x2a   :  { %355 = vmatpush3.bf16.msra.mxu0 %v382_v6 }
  0x2b   :  { %356 = vmatprep.subr.bf16.mxu0 %v473_v0 }
  0x2e   :  { %357 = vmatpush3.bf16.msra.mxu0 %v383_v7 }
  0x2f   :  { %358 = vmatprep.subr.bf16.mxu0 %v473_v0 }
  0x32   :  { %359 = vmatpush3.bf16.msra.mxu0 %v384_v8 }
  0x35   :  { %361 = vmatmul.mubr.bf16.vlgmr.msra.gmra.mrb[0].mxu0 %v385_v9 }
 0x108   :  { %v160_v13 = vpop.f32.mrb[0].mxu0 }
 0x109   :  { %v161_v14 = vadd.f32 %v316_v12, %v160_v13  ;;  %v362_v15 = vpop.f32.mrb[1].mxu0 }
 0x10a   :  { %v163_v16 = vpop.f32.mrb[2].mxu0 }
 0x10b   :  { %v164_v17 = vadd.f32 %v316_v12, %v163_v16  ;;  %179 = vmax.xlane.f32.xlu0 %v161_v14  ;;  %v363_v18 = vpop.f32.mrb[3].mxu0 }
 0x10d   :  { %v333_v19 = vpack.c.bf16 %v164_v17, %v161_v14 }
 0x10f   :  { %181 = vmax.xlane.f32.xlu0 %v164_v17  ;;  %334 = vst [vmem:[#allocation9] sm:$0xff] %v333_v19  }
 0x125   :  { %233 = vperm.xlu0 %376, %v539_v20  }
 0x198   :  { %v180_v22 = vpop.xlane.xlu0 %179 }
 0x199   :  { %v185_v23 = vmax.f32 %v183_v21, %v180_v22 }
 0x19b   :  { %v187_v25 = vsub.f32 %v183_v21, %v185_v23  ;;  %222 = vst.msk [vmem:[#allocation2] sm:$0xff] %vm40_vm1, %v185_v23  ;;  %199 = vperm.xlu1 %375, %v185_v23  }
 0x19c   :  { %v182_v26 = vpop.xlane.xlu0 %181 }
 0x19d   :  { %v186_v27 = vmax.f32 %v184_v24, %v182_v26  ;;  %v189_v47 = vmul.f32 1.442695, %v187_v25 }
 0x19f   :  { %v188_v29 = vsub.f32 %v184_v24, %v186_v27  ;;  %223 = vst.msk [vmem:[#allocation2 + $0x8] sm:$0xff] %vm40_vm1, %v186_v27  ;;  %204 = vperm.xlu1 %375, %v186_v27  }
 0x1a1   :  { %v191_v48 = vmul.f32 1.442695, %v188_v29 }
 0x1a2   :  { %v253_v2 = vld [vmem:[#allocation2] sm:$0xff] }
 0x1a3   :  { %236 = vperm.xlu1 %375, %v547_v30  }
 0x1a4   :  { %v234_v32 = vpop.permute.xlu0 %233 }
 0x1a5   :  { %vm238_vm2 = vcmp.eq.s32.totalorder %v229_v31, %v234_v32 }
 0x1a6   :  { %v240_v33 = vsel %vm238_vm2, %v161_v14, 0.0  ;;  %v254_v8 = vld [vmem:[#allocation2 + $0x8] sm:$0xff] }
 0x1a7   :  { %242 = vadd.xlane.f32.xlu0 %v240_v33 }
 0x21a   :  { %v200_v34 = vpop.permute.xlu1 %199 }
 0x21b   :  { %v207_v35 = vsub.f32 %v161_v14, %v200_v34 }
 0x21d   :  { %v209_v36 = vmul.f32 1.442695, %v207_v35 }
 0x21e   :  { %v205_v37 = vpop.permute.xlu1 %204 }
 0x21f   :  { %386 = vpow2.f32 %v209_v36  ;;  %v208_v38 = vsub.f32 %v164_v17, %v205_v37 }
 0x221   :  { %v211_v39 = vmul.f32 1.442695, %v208_v38 }
 0x222   :  { %v237_v41 = vpop.permute.xlu1 %236 }
 0x223   :  { %388 = vpow2.f32 %v211_v39  ;;  %vm239_vm3 = vcmp.eq.s32.totalorder %v229_v31, %v237_v41 }
 0x224   :  { %v241_v43 = vsel %vm239_vm3, %v164_v17, 0.0  ;;  %390 = vpow2.f32 %v189_v47 }
 0x225   :  { %392 = vpow2.f32 %v191_v48 }
 0x229   :  { %v387_v40 = vpop.eup %386 }
 0x22a   :  { %213 = vadd.xlane.f32.xlu1 %v387_v40 }
 0x22d   :  { %v389_v42 = vpop.eup %388 }
 0x22e   :  { %215 = vadd.xlane.f32.xlu1 %v389_v42  ;;  %v391_v49 = vpop.eup %390 }
 0x22f   :  { %v195_v51 = vmul.f32 %v391_v49, %v193_v50  ;;  %v393_v52 = vpop.eup %392 }
 0x230   :  { %v196_v56 = vmul.f32 %v393_v52, %v194_v54 }
 0x232   :  { %244 = vadd.xlane.f32.xlu1 %v241_v43 }
 0x234   :  { %v243_v45 = vpop.xlane.xlu0 %242 }
 0x235   :  { %v246_v46 = vadd.f32 %v243_v45, %v230_v44 }
 0x237   :  { %248 = vst.msk [vmem:[#allocation4] sm:$0xff] %vm40_vm1, %v246_v46 }
 0x23e   :  { %v265_v5 = vld [vmem:[#allocation4] sm:$0xff] }
 0x2b7   :  { %v214_v53 = vpop.xlane.xlu1 %213 }
 0x2b8   :  { %v217_v55 = vadd.f32 %v214_v53, %v195_v51 }
 0x2ba   :  { %220 = vst.msk [vmem:[#allocation3] sm:$0xff] %vm40_vm1, %v217_v55 }
 0x2bb   :  { %v216_v57 = vpop.xlane.xlu1 %215 }
 0x2bc   :  { %v218_v58 = vadd.f32 %v216_v57, %v196_v56 }
 0x2be   :  { %221 = vst.msk [vmem:[#allocation3 + $0x8] sm:$0xff] %vm40_vm1, %v218_v58 }
 0x2bf   :  { %v245_v60 = vpop.xlane.xlu1 %244 }
 0x2c0   :  { %v247_v61 = vadd.f32 %v245_v60, %v231_v59 }
 0x2c1   :  { %v255_v62 = vld [vmem:[#allocation3] sm:$0xff] }
 0x2c2   :  { %249 = vst.msk [vmem:[#allocation4 + $0x8] sm:$0xff] %vm40_vm1, %v247_v61  ;;  %394 = vlog2.f32 %v255_v62 }
 0x2c5   :  { %v256_v63 = vld [vmem:[#allocation3 + $0x8] sm:$0xff] }
 0x2c6   :  { %396 = vlog2.f32 %v256_v63 }
 0x2c9   :  { %v266_v10 = vld [vmem:[#allocation4 + $0x8] sm:$0xff] }
 0x2cc   :  { %v395_v0 = vpop.eup %394 }
 0x2cd   :  { %v258_v1 = vmul.f32 0.6931472, %v395_v0 }
 0x2cf   :  { %v261_v3 = vadd.f32 %v258_v1, %v253_v2 }
 0x2d0   :  { %v397_v4 = vpop.eup %396 }
 0x2d1   :  { %v260_v6 = vmul.f32 0.6931472, %v397_v4  ;;  %v267_v7 = vsub.f32 %v261_v3, %v265_v5 }
 0x2d3   :  { %v262_v9 = vadd.f32 %v260_v6, %v254_v8  ;;  %v269_v12 = vsel %vm263_vm4, %v267_v7, 0.0 }
 0x2d4   :  { %v271_v14 = vsel %vm40_vm1, %v269_v12, 0.0 }
 0x2d5   :  { %v268_v11 = vsub.f32 %v262_v9, %v266_v10 }
 0x2d7   :  { %v270_v13 = vsel %vm264_vm5, %v268_v11, 0.0 }
 0x2d8   :  { %v272_v15 = vsel %vm40_vm1, %v270_v13, 0.0 }
 0x2d9   :  { %v273_v16 = vadd.f32 %v272_v15, %v271_v14 }
 0x2db   :  { %274 = vadd.xlane.f32.xlu1 %v273_v16 }
 0x2dc   :  { %431 = shalt.err (!%p428_p12)
}
 0x2dd   :  { %s432_s16 = scalar_lea.hbm %s590_s5, 128 }
 0x2de   :  { %p433_p13 = scmp.ne.s32.totalorder %s590_s5, %s432_s16  ;;  %p436_p0 = scmp.lt.u32.totalorder %s432_s16, %s590_s5 }
 0x2e0   :  { %p438_p1 = pnand %p436_p0, %p433_p13 }
 0x2e2   :  { %441 = shalt.err (!%p438_p1)
}
 0x2e3   :  { %306 = dma.vmem_to_hbm [thread:$0]  %s301_s12, 128, %s590_s5, [#allocation10], %s471_s28, %s471_s28, %s472_s29  }
 0x2e4   :  { %s478_s23 = smov [#allocation8]  }
 0x2e5   :  { %s291_s24 = sshll.u32 %s478_s23, 4  ;;  %s292_s24 = int_to_ptr.vmem [resolvable:$true] %s291_s24 }
 0x2e6   :  { %s442_s26 = scalar_lea.vmem %s292_s24, 128  ;;  %p447_p3 = scmp.lt.s32.totalorder %s292_s24, %s292_s24 }
 0x2e7   :  { %p443_p2 = scmp.ne.s32.totalorder %s292_s24, %s442_s26  ;;  %p448_p4 = scmp.lt.s32.totalorder %s442_s26, %s442_s26 }
 0x2e9   :  { %p449_p5 = por %p448_p4, %p447_p3 }
 0x2eb   :  { %p450_p6 = pnand %p449_p5, %p443_p2 }
 0x368   :  { %v275_v17 = vpop.xlane.xlu1 %274 }
 0x369   :  { %v276_v18 = vrot.slane %v275_v17, 4 }
 0x36b   :  { %v277_v19 = vadd.f32 %v276_v18, %v275_v17 }
 0x36d   :  { %v278_v20 = vrot.slane %v277_v19, 2 }
 0x36f   :  { %v279_v21 = vadd.f32 %v278_v20, %v277_v19 }
 0x371   :  { %v280_v22 = vrot.slane %v279_v21, 1 }
 0x373   :  { %v281_v23 = vadd.f32 %v280_v22, %v279_v21 }
 0x375   :  { %364 = vpush %v281_v23 }
 0x3a6   :  { %s365_s25 = spop %364 }
 0x3a7   :  { %v283_v24 = vstv %s365_s25 }
 0x3a8   :  { %284 = vst [vmem:[#allocation8] sm:$0xff] %v283_v24 }
 0x3a9   :  { %453 = shalt.err (!%p450_p6)
}
 0x3aa   :  { %s454_s28 = scalar_lea.hbm %s589_s4, 128 }
 0x3ab   :  { %p455_p7 = scmp.ne.s32.totalorder %s589_s4, %s454_s28  ;;  %p458_p8 = scmp.lt.u32.totalorder %s454_s28, %s589_s4 }
 0x3ad   :  { %p460_p9 = pnand %p458_p8, %p455_p7 }
 0x3af   :  { %463 = shalt.err (!%p460_p9)
}
 0x3b0   :  { %294 = dma.vmem_to_hbm [thread:$0]  %s292_s24, 128, %s589_s4, [#allocation7]  }
 0x3b1   :  { %466 = dma.done.wait [#allocation7], 128  }
 0x3b2   :  { %467 = vsyncadd [#allocation7], 4294967168 }
 0x3b3   :  { %468 = dma.done.wait [#allocation10], 128  }
 0x3b4   :  { %469 = vsyncadd [#allocation10], 4294967168 }
 0x3b5   :  { %313 = vsyncpa [#allocation6], 1 }
 0x3b6   :  { %314 = vsyncpa [#allocation7], 1 }
 0x3b7   :  { %315 = vsyncpa [#allocation10], 1 }

</bundles_post_ra>
